<compile_context>
chip_gen: v7x
topology: tpu7x:2x2x1
jax: 0.10.0
libtpu: 0.0.40
codegen_flags: <defaults>
</compile_context>

<pallas_src>
import functools

import jax
import jax.numpy as jnp
from jax.experimental import pallas as pl
from jax.experimental.pallas import tpu as pltpu


def _round_up(x: int, m: int) -> int:
    return ((x + m - 1) // m) * m


def _distill_kernel(s_tgt_ref, s_ref, t_ref, out_ref, *,
                    temperature, block_b, batch, has_padding):
    s = s_ref[...].astype(jnp.float32)          # (block_b, C) student logits
    t = t_ref[...].astype(jnp.float32)          # (block_b, C) teacher logits
    bb = s.shape[0]
    inv_t = 1.0 / float(temperature)

    # ---- student: one row-max, reused for T-scaled and unscaled logsumexp ----
    max_s = jnp.max(s, axis=1, keepdims=True)
    s_shift = s - max_s
    if temperature == 1.0:
        st_shift = s_shift
    else:
        st_shift = s_shift * inv_t
    sum_exp_st = jnp.sum(jnp.exp(st_shift), axis=1, keepdims=True)   # (bb, 1)
    log_z_st = jnp.log(sum_exp_st)                                   # (bb, 1)

    # ---- teacher: shifted logits + exp (softmax numerator), per-row Z ----
    max_t = jnp.max(t, axis=1, keepdims=True)
    if temperature == 1.0:
        tt_shift = t - max_t
    else:
        tt_shift = (t - max_t) * inv_t
    exp_t = jnp.exp(tt_shift)
    sum_exp_t = jnp.sum(exp_t, axis=1, keepdims=True)                # (bb, 1)
    log_z_t = jnp.log(sum_exp_t)                                     # (bb, 1)

    # ---- KL with logZ terms folded out (no log_p_t / log_p_s tiles) ----
    # sum_c p_t*(log p_t - log p_s)
    #   = [sum_c exp_t*(tt_shift - st_shift)] / sum_exp_t - logZ_t + logZ_st
    weighted = jnp.sum(exp_t * (tt_shift - st_shift), axis=1, keepdims=True)
    kl_rows = weighted / sum_exp_t - log_z_t + log_z_st              # (bb, 1)

    # ---- hard CE: gather was done in the wrapper; pure per-row math here ----
    if temperature == 1.0:
        log_z_s = log_z_st                       # reuse, skip second exp pass
    else:
        sum_exp_s = jnp.sum(jnp.exp(s_shift), axis=1, keepdims=True)
        log_z_s = jnp.log(sum_exp_s)
    s_tgt = s_tgt_ref[...].astype(jnp.float32)                       # (bb, 1)
    ce_rows = -(s_tgt - max_s - log_z_s)                             # (bb, 1)

    if has_padding:
        # Ragged last block: rows >= batch hold unspecified data which may
        # yield Inf/NaN through exp/log -> must use where-select, not multiply.
        row_ids = (pl.program_id(0) * block_b
                   + jax.lax.broadcasted_iota(jnp.int32, (bb, 1), 0))
        valid = row_ids < batch
        kl_rows = jnp.where(valid, kl_rows, 0.0)
        ce_rows = jnp.where(valid, ce_rows, 0.0)

    kl_partial = jnp.sum(kl_rows)
    ce_partial = jnp.sum(ce_rows)

    # Lane-dense (1, 8, 128) partial-sum tile: lane 0 = KL, lane 1 = CE.
    lane = jax.lax.broadcasted_iota(jnp.int32, out_ref.shape, 2)
    out_ref[...] = jnp.where(lane == 0, kl_partial,
                             jnp.where(lane == 1, ce_partial, 0.0))


def distillation_loss(student_logits, teacher_logits, targets,
                      temperature: float = 1.0, alpha: float = 0.5):
    batch, num_classes = student_logits.shape
    itemsize = jnp.dtype(student_logits.dtype).itemsize

    # ---- block_b sizing -----------------------------------------------------
    # (a) ~6 MiB of pipelined input (student + teacher tiles) per grid step so
    #     the ~0.35 us/step overhead is amortized on the mem-bound path.
    # (b) VMEM budget that also counts the in-kernel f32 intermediates
    #     (~6 x block_b*C*4 B) on top of 2 inputs x 2 pipeline buffers,
    #     kept <= 36 MiB so it fits v7x's 64 MiB/TC with headroom.
    target_step_bytes = 6 * 1024 * 1024
    vmem_budget = 36 * 1024 * 1024
    bytes_per_row_inputs = 2 * num_classes * itemsize
    rows_for_step = target_step_bytes // max(bytes_per_row_inputs, 1)
    bytes_per_row_vmem = 2 * bytes_per_row_inputs + 6 * num_classes * 4
    rows_for_vmem = vmem_budget // max(bytes_per_row_vmem, 1)
    block_b = max(8, (min(rows_for_step, rows_for_vmem) // 8) * 8)
    # (c) >= 2 grid blocks so the 'parallel' batch axis feeds both v7x cores.
    if batch > 8:
        block_b = min(block_b, _round_up(-(-batch // 2), 8))
    block_b = min(block_b, _round_up(batch, 8))

    num_blocks = pl.cdiv(batch, block_b)
    has_padding = (num_blocks * block_b != batch)

    # Hard-CE gather done once in the wrapper (B scalars) instead of an
    # in-kernel one-hot pass over the full (block_b, C) tile.
    tgt = targets.astype(jnp.int32)
    s_tgt = jnp.take_along_axis(student_logits, tgt[:, None], axis=1)  # (B, 1)

    kernel = functools.partial(
        _distill_kernel,
        temperature=float(temperature),
        block_b=block_b,
        batch=batch,
        has_padding=has_padding,
    )

    # Scoped-VMEM limit derived from estimated usage, clamped under v7x 64 MiB.
    est_vmem = (2 * 2 * block_b * num_classes * itemsize   # double-buffered in
                + 6 * block_b * num_classes * 4            # f32 intermediates
                + 2 * 8 * 128 * 4 + (1 << 20))             # out tiles + slack
    vmem_limit = int(min(max(2 * est_vmem, 32 * 1024 * 1024),
                         56 * 1024 * 1024))

    # NOTE: logits are passed in their native dtype (no f32 upcast, no pad).
    partials = pl.pallas_call(
        kernel,
        out_shape=jax.ShapeDtypeStruct((num_blocks, 8, 128), jnp.float32),
        grid_spec=pltpu.PrefetchScalarGridSpec(
            num_scalar_prefetch=0,
            grid=(num_blocks,),
            in_specs=[
                pl.BlockSpec((block_b, 1), lambda i: (i, 0)),
                pl.BlockSpec((block_b, num_classes), lambda i: (i, 0)),
                pl.BlockSpec((block_b, num_classes), lambda i: (i, 0)),
            ],
            out_specs=pl.BlockSpec((1, 8, 128), lambda i: (i, 0, 0)),
        ),
        compiler_params=pltpu.CompilerParams(
            dimension_semantics=("parallel",),
            vmem_limit_bytes=vmem_limit,
        ),
    )(s_tgt, student_logits, teacher_logits)

    kl_sum = jnp.sum(partials[:, 0, 0])
    ce_sum = jnp.sum(partials[:, 0, 1])
    t_f = float(temperature)
    soft_loss = (kl_sum / batch) * (t_f * t_f)
    hard_loss = ce_sum / batch
    return alpha * soft_loss + (1.0 - alpha) * hard_loss


def _reference_loss(student_logits, teacher_logits, targets,
                    temperature=1.0, alpha=0.5):
    s = student_logits.astype(jnp.float32)
    t = teacher_logits.astype(jnp.float32)
    T = temperature
    log_p_s = jax.nn.log_softmax(s / T, axis=1)
    p_t = jax.nn.softmax(t / T, axis=1)
    B = s.shape[0]
    kl = jnp.sum(jnp.where(p_t > 0, p_t * (jnp.log(p_t) - log_p_s), 0.0)) / B
    soft_loss = kl * (T * T)
    log_p = jax.nn.log_softmax(s, axis=1)
    ce = -jnp.mean(jnp.take_along_axis(log_p, targets[:, None], axis=1))
    return alpha * soft_loss + (1 - alpha) * ce


if __name__ == "__main__":
    key = jax.random.PRNGKey(0)
    k1, k2, k3 = jax.random.split(key, 3)

    ok = True
    # B=10 exercises the ragged (unpadded) last block + 2-block grid;
    # B=8 exercises the exact-fit single-block path.
    for B, C in ((10, 32), (8, 32)):
        student_logits = jax.random.normal(k1, (B, C), dtype=jnp.float32)
        teacher_logits = jax.random.normal(k2, (B, C), dtype=jnp.float32)
        targets = jax.random.randint(k3, (B,), 0, C, dtype=jnp.int32)

        for temperature, alpha in ((2.0, 0.5), (1.0, 0.3)):
            loss = distillation_loss(student_logits, teacher_logits, targets,
                                     temperature=temperature, alpha=alpha)
            loss = jax.block_until_ready(loss)
            ref = _reference_loss(student_logits, teacher_logits, targets,
                                  temperature=temperature, alpha=alpha)
            if not jnp.allclose(loss, ref, atol=1e-5, rtol=1e-5):
                ok = False
                print("MISMATCH", B, C, temperature, alpha,
                      float(loss), float(ref))

    if ok:
        print("KERNEL_OK")
</pallas_src>

<mosaic_0001>
module attributes {stable_mosaic.version = 11 : i64} {
  func.func @_distill_kernel(%arg0: i32, %arg1: memref<8x1xf32, #tpu.memory_space<vmem>>, %arg2: memref<8x32xf32, #tpu.memory_space<vmem>>, %arg3: memref<8x32xf32, #tpu.memory_space<vmem>>, %arg4: memref<1x8x128xf32, #tpu.memory_space<vmem>>) attributes {dimension_semantics = [#tpu.dimension_semantics<parallel>], iteration_bounds = array<i64: 2>, scalar_prefetch = 0 : i64, scratch_operands = 0 : i64, tpu.core_type = #tpu.core_type<tc>, window_params = [{transform_indices = @transform_0, window_bounds = array<i64: 8, 1>}, {transform_indices = @transform_1, window_bounds = array<i64: 8, 32>}, {transform_indices = @transform_2, window_bounds = array<i64: 8, 32>}, {transform_indices = @transform_3, window_bounds = array<i64: 1, 8, 128>}]} {
    %c0 = arith.constant 0 : index
    %c0_0 = arith.constant 0 : index
    %0 = vector.load %arg2[%c0, %c0_0] : memref<8x32xf32, #tpu.memory_space<vmem>>, vector<8x32xf32>
    %c0_1 = arith.constant 0 : index
    %c0_2 = arith.constant 0 : index
    %1 = vector.load %arg3[%c0_1, %c0_2] : memref<8x32xf32, #tpu.memory_space<vmem>>, vector<8x32xf32>
    %cst = arith.constant dense<0xFF800000> : vector<8xf32>
    %2 = vector.multi_reduction <maximumf>, %0, %cst [1] : vector<8x32xf32> to vector<8xf32>
    %3 = vector.shape_cast %2 : vector<8xf32> to vector<8x1xf32>
    %4 = vector.broadcast %3 : vector<8x1xf32> to vector<8x32xf32>
    %5 = arith.subf %0, %4 : vector<8x32xf32>
    %cst_3 = arith.constant 5.000000e-01 : f32
    %6 = vector.broadcast %cst_3 : f32 to vector<8x32xf32>
    %7 = arith.mulf %5, %6 : vector<8x32xf32>
    %8 = math.exp %7 : vector<8x32xf32>
    %cst_4 = arith.constant dense<0.000000e+00> : vector<8xf32>
    %9 = vector.multi_reduction <add>, %8, %cst_4 [1] : vector<8x32xf32> to vector<8xf32>
    %10 = vector.shape_cast %9 : vector<8xf32> to vector<8x1xf32>
    %11 = math.log %10 : vector<8x1xf32>
    %cst_5 = arith.constant dense<0xFF800000> : vector<8xf32>
    %12 = vector.multi_reduction <maximumf>, %1, %cst_5 [1] : vector<8x32xf32> to vector<8xf32>
    %13 = vector.shape_cast %12 : vector<8xf32> to vector<8x1xf32>
    %14 = vector.broadcast %13 : vector<8x1xf32> to vector<8x32xf32>
    %15 = arith.subf %1, %14 : vector<8x32xf32>
    %cst_6 = arith.constant 5.000000e-01 : f32
    %16 = vector.broadcast %cst_6 : f32 to vector<8x32xf32>
    %17 = arith.mulf %15, %16 : vector<8x32xf32>
    %18 = math.exp %17 : vector<8x32xf32>
    %cst_7 = arith.constant dense<0.000000e+00> : vector<8xf32>
    %19 = vector.multi_reduction <add>, %18, %cst_7 [1] : vector<8x32xf32> to vector<8xf32>
    %20 = vector.shape_cast %19 : vector<8xf32> to vector<8x1xf32>
    %21 = math.log %20 : vector<8x1xf32>
    %22 = arith.subf %17, %7 : vector<8x32xf32>
    %23 = arith.mulf %18, %22 : vector<8x32xf32>
    %cst_8 = arith.constant dense<0.000000e+00> : vector<8xf32>
    %24 = vector.multi_reduction <add>, %23, %cst_8 [1] : vector<8x32xf32> to vector<8xf32>
    %25 = vector.shape_cast %24 : vector<8xf32> to vector<8x1xf32>
    %26 = arith.divf %25, %20 : vector<8x1xf32>
    %27 = arith.subf %26, %21 : vector<8x1xf32>
    %28 = arith.addf %27, %11 : vector<8x1xf32>
    %29 = math.exp %5 : vector<8x32xf32>
    %cst_9 = arith.constant dense<0.000000e+00> : vector<8xf32>
    %30 = vector.multi_reduction <add>, %29, %cst_9 [1] : vector<8x32xf32> to vector<8xf32>
    %31 = vector.shape_cast %30 : vector<8xf32> to vector<8x1xf32>
    %32 = math.log %31 : vector<8x1xf32>
    %c0_10 = arith.constant 0 : index
    %c0_11 = arith.constant 0 : index
    %33 = vector.load %arg1[%c0_10, %c0_11] : memref<8x1xf32, #tpu.memory_space<vmem>>, vector<8x1xf32>
    %34 = arith.subf %33, %3 : vector<8x1xf32>
    %35 = arith.subf %34, %32 : vector<8x1xf32>
    %cst_12 = arith.constant 0.000000e+00 : f32
    %36 = vector.broadcast %cst_12 : f32 to vector<8x1xf32>
    %37 = arith.subf %36, %35 : vector<8x1xf32>
    %c8_i32 = arith.constant 8 : i32
    %38 = arith.muli %arg0, %c8_i32 : i32
    %39 = tpu.iota {dimensions = array<i32: 0>} : vector<8x1xi32>
    %40 = vector.broadcast %38 : i32 to vector<8x1xi32>
    %41 = arith.addi %40, %39 : vector<8x1xi32>
    %c10_i32 = arith.constant 10 : i32
    %42 = vector.broadcast %c10_i32 : i32 to vector<8x1xi32>
    %43 = arith.cmpi slt, %41, %42 : vector<8x1xi32>
    %cst_13 = arith.constant 0.000000e+00 : f32
    %44 = vector.broadcast %cst_13 : f32 to vector<8x1xf32>
    %45 = arith.select %43, %28, %44 : vector<8x1xi1>, vector<8x1xf32>
    %cst_14 = arith.constant 0.000000e+00 : f32
    %46 = vector.broadcast %cst_14 : f32 to vector<8x1xf32>
    %47 = arith.select %43, %37, %46 : vector<8x1xi1>, vector<8x1xf32>
    %48 = vector.shape_cast %45 : vector<8x1xf32> to vector<1x8x1xf32>
    %cst_15 = arith.constant dense<0.000000e+00> : vector<1xf32>
    %49 = vector.multi_reduction <add>, %48, %cst_15 [1, 2] : vector<1x8x1xf32> to vector<1xf32>
    %50 = vector.shape_cast %49 : vector<1xf32> to vector<1x1x1xf32>
    %51 = vector.extract %50[0, 0, 0] : f32 from vector<1x1x1xf32>
    %52 = vector.shape_cast %47 : vector<8x1xf32> to vector<1x8x1xf32>
    %cst_16 = arith.constant dense<0.000000e+00> : vector<1xf32>
    %53 = vector.multi_reduction <add>, %52, %cst_16 [1, 2] : vector<1x8x1xf32> to vector<1xf32>
    %54 = vector.shape_cast %53 : vector<1xf32> to vector<1x1x1xf32>
    %55 = vector.extract %54[0, 0, 0] : f32 from vector<1x1x1xf32>
    %56 = tpu.iota {dimensions = array<i32: 2>} : vector<1x8x128xi32>
    %c0_i32 = arith.constant 0 : i32
    %57 = vector.broadcast %c0_i32 : i32 to vector<1x8x128xi32>
    %58 = arith.cmpi eq, %56, %57 : vector<1x8x128xi32>
    %c1_i32 = arith.constant 1 : i32
    %59 = vector.broadcast %c1_i32 : i32 to vector<1x8x128xi32>
    %60 = arith.cmpi eq, %56, %59 : vector<1x8x128xi32>
    %cst_17 = arith.constant 0.000000e+00 : f32
    %61 = vector.broadcast %55 : f32 to vector<1x8x128xf32>
    %62 = vector.broadcast %cst_17 : f32 to vector<1x8x128xf32>
    %63 = arith.select %60, %61, %62 : vector<1x8x128xi1>, vector<1x8x128xf32>
    %64 = vector.broadcast %51 : f32 to vector<1x8x128xf32>
    %65 = arith.select %58, %64, %63 : vector<1x8x128xi1>, vector<1x8x128xf32>
    %c0_18 = arith.constant 0 : index
    %c0_19 = arith.constant 0 : index
    %c0_20 = arith.constant 0 : index
    %66 = vector.load %arg4[%c0_18, %c0_19, %c0_20] : memref<1x8x128xf32, #tpu.memory_space<vmem>>, vector<1x8x128xf32>
    tpu.vector_store %arg4[%c0_18, %c0_19, %c0_20], %65 {strides = array<i32>} : memref<1x8x128xf32, #tpu.memory_space<vmem>>, vector<1x8x128xf32>,
    return
  }
  func.func @transform_0(%arg0: i32) -> (i32, i32) {
    %c0_i32 = arith.constant 0 : i32
    %c0_i32_0 = arith.constant 0 : i32
    return %arg0, %c0_i32 : i32, i32
  }
  func.func @transform_1(%arg0: i32) -> (i32, i32) {
    %c0_i32 = arith.constant 0 : i32
    %c0_i32_0 = arith.constant 0 : i32
    return %arg0, %c0_i32 : i32, i32
  }
  func.func @transform_2(%arg0: i32) -> (i32, i32) {
    %c0_i32 = arith.constant 0 : i32
    %c0_i32_0 = arith.constant 0 : i32
    return %arg0, %c0_i32 : i32, i32
  }
  func.func @transform_3(%arg0: i32) -> (i32, i32, i32) {
    %c0_i32 = arith.constant 0 : i32
    %c0_i32_0 = arith.constant 0 : i32
    %c0_i32_1 = arith.constant 0 : i32
    return %arg0, %c0_i32, %c0_i32_0 : i32, i32, i32
  }
}

</mosaic_0001>

<bundles_post_ra>
// kernel: tpu_custom_call.1
= control target key start
LH: loop header
LB: loop body
LE: loop exit
PB: predicated region body
PF: predicated region fallthrough
CT: control target
= control target key end

     0   :  { %8 = vsyncpa [#allocation3], 0  ;;  %s799_s0 = inlined_call_operand.vmem [shape: f32[10,1], index: 0, kind: input, shape index: {}]   ;;  %s800_s1 = inlined_call_operand.vmem [shape: f32[10,32], index: 1, kind: input, shape index: {}]   ;;  %s801_s2 = inlined_call_operand.hbm [shape: f32[10,32], index: 2, kind: input, shape index: {}]   ;;  %s802_s3 = inlined_call_operand.hbm [shape: f32[2,8,128], index: 3, kind: output, shape index: {}]  }
   0x1   :  { %10 = vsyncpa [#allocation3 + $0x1], 0 }
   0x2   :  { %11 = vsyncpa [#allocation4], 0 }
   0x3   :  { %13 = vsyncpa [#allocation4 + $0x1], 0  ;;  %s612_s12 = smov 0   ;;  %s614_s13 = smov 0  }
   0x4   :  { %s616_s14 = smov 0   ;;  %s618_s15 = smov 0  }
   0x5 LB: > { %s633_s16 = sadd.s32 4294967295, %s588_s15   ;;  %s413_s17 = sadd.s32 4294967294, %s588_s15   ;;  %s588_s15 = sphi %s618_s15, %s817_s15   ;;  %s584_s14 = sphi %s616_s14, %s816_s14   ;;  %s580_s13 = sphi %s614_s13, %s815_s13   ;;  %s576_s12 = sphi %s612_s12, %s814_s12  }
   0x6   : > { %s637_s18 = sadd.s32 1, %s588_s15   ;;  %s78_s19 = sadd.s32 1, %s584_s14 }
   0x7   : > { %s75_s20 = ssub.s32 %s588_s15, %s637_s18  ;;  %p85_p0 = scmp.ne.s32.totalorder %s584_s14, %s580_s13 }
   0x8   : > { %p76_p1 = scmp.eq.s32.totalorder %s75_s20, 0  ;;  %p86_p2 = scmp.eq.s32.totalorder %s588_s15, 0 }
   0x9   : > { %p91_p3 = scmp.ne.s32.totalorder %s580_s13, %s576_s12  ;;  %p92_p4 = scmp.eq.s32.totalorder %s633_s16, 0 }
   0xa   : > { %s649_s21 = scalar_select %p76_p1, %s584_s14, %s78_s19  }
   0xb   : > { %p651_p5 = por %p86_p2, %p85_p0  ;;  %p655_p6 = por %p92_p4, %p91_p3 }
   0xc   : > { %p115_p7 = scmp.eq.s32.totalorder %s633_s16, 1  ;;  %p121_p8 = scmp.eq.s32.totalorder %s413_s17, 1 }
   0xd   : > { %p444_p10 = scmp.lt.s32.totalorder %s588_s15, 2  ;;  %s155_s26 = sand.u32 1, %s584_s14  }
   0xe   : > { %p662_p11 = por %p115_p7, %p85_p0  ;;  %p666_p12 = por %p121_p8, %p91_p3 }
   0xf   : > { %s417_s27 = sshll.u32 %s588_s15, 7  ;;  %s416_s28 = sshll.u32 %s155_s26, 3 }
  0x10   : > { %s806_s24 = scalar_select %p662_p11, 1, 0 }
  0x11   : > { %s807_s25 = scalar_select %p666_p12, 1, 0 }
  0x12   : > { %s675_s4 = scalar_lea.hbm %s801_s2, %s417_s27  ;;  %s159_s5 = scalar_lea.vmem [#allocation2], %s416_s28 }
  0x13   : > { %s166_s6 = sshll.u32 %s159_s5, 4  ;;  %p679_p13 = pnand %p444_p10, %p651_p5  ;;  %s683_s6 = int_to_ptr.vmem [resolvable:$true] %s166_s6 }
  0x14   : > { %s156_s8 = scalar_lea.sflag [#allocation3], %s155_s26  ;;  %s492_s9 = scalar_lea.hbm %s675_s4, 128 }
  0x15   : > { %p493_p2 = scmp.ne.s32.totalorder %s675_s4, %s492_s9  ;;  %p494_p3 = pneg %p679_p13 }
  0x16   : > { %s497_s17 = scalar_lea.hbm %s801_s2, 256  ;;  %p498_p5 = scmp.lt.u32.totalorder %s675_s4, %s801_s2 }
  0x17   : > { %p495_p4 = pnand %p494_p3, %p493_p2  ;;  %p499_p8 = scmp.lt.u32.totalorder %s497_s17, %s492_s9 }
  0x18   : > { %p501_p9 = scmp.lt.u32.totalorder %s492_s9, %s675_s4 }
  0x19   : > { %p496_p7 = pneg %p495_p4  ;;  %p500_p10 = por %p499_p8, %p498_p5 }
  0x1b   : > { %p502_p0 = por %p501_p9, %p500_p10 }
  0x1d   : > { %p503_p1 = pnand %p502_p0, %p496_p7 }
  0x1f   : > { %506 = shalt.err (!%p503_p1)
}
  0x20   : > { %s507_s22 = scalar_lea.vmem %s683_s6, 128  ;;  %s590_s26 = smov [#allocation2]  }
  0x21   : > { %p508_p2 = scmp.ne.s32.totalorder %s683_s6, %s507_s22  ;;  %s512_s27 = sshll.u32 %s590_s26, 4  ;;  %s513_s27 = int_to_ptr.vmem [resolvable:$false] %s512_s27 }
  0x22   : > { %s514_s28 = scalar_lea.vmem %s513_s27, 256  ;;  %p515_p11 = scmp.lt.s32.totalorder %s683_s6, %s513_s27 }
  0x23   : > { %p510_p4 = pnand %p508_p2, %p494_p3  ;;  %p516_p5 = scmp.lt.s32.totalorder %s514_s28, %s507_s22 }
  0x25   : > { %p511_p12 = pneg %p510_p4  ;;  %p517_p8 = por %p516_p5, %p515_p11 }
  0x27   : > { %p518_p9 = pnand %p517_p8, %p511_p12 }
  0x29   : > { %521 = shalt.err (!%p518_p9)
}
  0x2a   : > { %439 = dma.hbm_to_vmem [thread:$0]  (!%p679_p13), %s675_s4, 128, %s683_s6, %s156_s8  }
  0x2b   : > { %p809_p0 = scmp.lt.s32.totalorder %s588_s15, 3  ;;  %p810_p1 = scmp.ge.s32.totalorder %s588_s15, 1 }
  0x2d   : > { %p172_p3 = pnand %p810_p1, %p809_p0 }
  0x2e   : > { %s717_s29 = sand.u32 (!%p172_p3), 1, %s580_s13  }
  0x2f   : > { %175 = sbr.rel (%p172_p3) target bundleno = 604 (0x25c), region = 32  ;;  %s419_s30 = sshll.u32 (!%p172_p3), %s717_s29, 3 }
  0x30   : > { %s178_s5 = scalar_lea.sflag (!%p172_p3), [#allocation3], %s717_s29  ;;  %s181_s7 = scalar_lea.vmem (!%p172_p3), [#allocation2], %s419_s30 }
  0x36   : > { %567 = dma.done.wait (%p655_p6), %s178_s5, 128  }
  0x37   : > { %569 = vsyncadd (%p655_p6), %s178_s5, 4294967168  ;;  %p212_p11 = scmp.lt.s32.totalorder %s633_s16, 1  ;;  %vm222_vm0 = vcmask 261120   ;;  %v221_v0 = vld [vmem:[%s181_s7] sm:$0xff]  ;;  %v268_v25 = vlaneseq  ;;  %s423_s23 = sshll.u32 %s633_s16, 3  ;;  %vm275_vm2 = vcmask 7168  }
  0x38   : > { %v235_v2 = vsel %vm222_vm0, %v221_v0, -inf  ;;  %v270_v28 = vstv %s423_s23  ;;  %s425_s20 = sshll.u32 %s633_s16, 7  ;;  %s211_s26 = scalar_lea.vmem [#allocation5], %s419_s30 }
  0x39   : > { %s729_s4 = scalar_select %p212_p11, %s633_s16, 1  ;;  %236 = vmax.xlane.f32.xlu0 %v235_v2  ;;  %v269_v26 = vshrl.u32 %v268_v25, 7  ;;  %v297_v62 = vand.u32 127, %v268_v25 }
  0x3a   : > { %s319_s27 = sshll.u32 %s211_s26, 4  ;;  %s306_s16 = scalar_lea.sflag [#allocation4], %s717_s29  ;;  %s757_s27 = int_to_ptr.vmem [resolvable:$true] %s319_s27 }
  0x3b   : > { %s421_s6 = sshll.u32 %s729_s4, 3  ;;  %v271_v34 = vadd.s32 %v270_v28, %v269_v26  ;;  %vm299_vm3 = vcmp.eq.s32.totalorder %v297_v62, 1  ;;  %vm298_vm4 = vcmp.eq.s32.totalorder %v297_v62, 0  ;;  %s755_s4 = scalar_lea.hbm %s802_s3, %s425_s20 }
  0x3c   : > { %s219_s10 = scalar_lea.vmem %s800_s1, %s421_s6  ;;  %s215_s19 = scalar_lea.vmem %s799_s0, %s421_s6 }
  0x3d   : > { %v220_v1 = vld [vmem:[%s219_s10] sm:$0xff]  ;;  %vm272_vm1 = vcmp.lt.s32.totalorder %v271_v34, 10  ;;  %s522_s30 = scalar_lea.vmem %s757_s27, 128  ;;  %p811_p12 = scmp.ne.s32.totalorder %s806_s24, 0 }
  0x3e   : > { %v223_v3 = vsel %vm222_vm0, %v220_v1, -inf  ;;  %v263_v31 = vld [vmem:[%s215_s19] sm:$0xff]  ;;  %p523_p6 = scmp.ne.s32.totalorder %s757_s27, %s522_s30  ;;  %s591_s6 = smov [#allocation5]  }
  0x3f   : > { %224 = vmax.xlane.f32.xlu0 %v223_v3  ;;  %s526_s8 = sshll.u32 %s591_s6, 4  ;;  %s527_s8 = int_to_ptr.vmem [resolvable:$false] %s526_s8 }
  0x40   : > { %p524_p13 = pnand %p523_p6, %p811_p12  ;;  %s528_s9 = scalar_lea.vmem %s527_s8, 256 }
  0x41   : > { %p529_p10 = scmp.lt.s32.totalorder %s757_s27, %s527_s8  ;;  %p530_p2 = scmp.lt.s32.totalorder %s528_s9, %s522_s30 }
  0x42   : > { %p525_p7 = pneg %p524_p13 }
  0x43   : > { %p531_p4 = por %p530_p2, %p529_p10 }
  0x45   : > { %p532_p5 = pnand %p531_p4, %p525_p7 }
  0xc6   : > { %v237_v4 = vpop.xlane.xlu0 %236 }
  0xc7   : > { %v238_v5 = vsub.f32 %v221_v0, %v237_v4 }
  0xc9   : > { %v239_v6 = vmul.f32 0.5, %v238_v5 }
  0xcb   : > { %v240_v8 = vmul.f32 1.442695, %v239_v6 }
  0xcc   : > { %v225_v7 = vpop.xlane.xlu0 %224 }
  0xcd   : > { %v226_v9 = vsub.f32 %v220_v1, %v225_v7  ;;  %478 = vpow2.f32 %v240_v8  ;;  %v264_v37 = vsub.f32 %v263_v31, %v225_v7 }
  0xcf   : > { %v227_v10 = vmul.f32 0.5, %v226_v9  ;;  %v256_v11 = vmul.f32 1.442695, %v226_v9 }
  0xd1   : > { %v228_v12 = vmul.f32 1.442695, %v227_v10  ;;  %480 = vpow2.f32 %v256_v11  ;;  %v247_v17 = vsub.f32 %v239_v6, %v227_v10 }
  0xd3   : > { %482 = vpow2.f32 %v228_v12 }
  0xd7   : > { %v479_v13 = vpop.eup %478 }
  0xd8   : > { %v242_v14 = vsel %vm222_vm0, %v479_v13, 0.0  ;;  %v248_v20 = vmul.f32 %v479_v13, %v247_v17 }
  0xd9   : > { %243 = vadd.xlane.f32.xlu1 %v242_v14 }
  0xda   : > { %v249_v21 = vsel %vm222_vm0, %v248_v20, 0.0 }
  0xdb   : > { %v481_v15 = vpop.eup %480 }
  0xdc   : > { %v258_v16 = vsel %vm222_vm0, %v481_v15, 0.0 }
  0xdd   : > { %v483_v18 = vpop.eup %482  ;;  %259 = vadd.xlane.f32.xlu1 %v258_v16 }
  0xde   : > { %v230_v19 = vsel %vm222_vm0, %v483_v18, 0.0 }
  0xdf   : > { %231 = vadd.xlane.f32.xlu0 %v230_v19 }
  0xe1   : > { %250 = vadd.xlane.f32.xlu1 %v249_v21 }
 0x166   : > { %v244_v22 = vpop.xlane.xlu1 %243 }
 0x167   : > { %484 = vlog2.f32 %v244_v22 }
 0x168   : > { %486 = vrcp.f32 %v244_v22 }
 0x16a   : > { %v260_v23 = vpop.xlane.xlu1 %259 }
 0x16b   : > { %488 = vlog2.f32 %v260_v23 }
 0x16c   : > { %v232_v24 = vpop.xlane.xlu0 %231 }
 0x16d   : > { %490 = vlog2.f32 %v232_v24 }
 0x16e   : > { %v251_v30 = vpop.xlane.xlu1 %250 }
 0x171   : > { %v485_v27 = vpop.eup %484 }
 0x172   : > { %v487_v29 = vpop.eup %486  ;;  %v246_v32 = vmul.f32 0.6931472, %v485_v27 }
 0x173   : > { %v253_v33 = vmul.f32 %v487_v29, %v251_v30 }
 0x175   : > { %v489_v35 = vpop.eup %488  ;;  %v254_v40 = vsub.f32 %v253_v33, %v246_v32 }
 0x176   : > { %v262_v38 = vmul.f32 0.6931472, %v489_v35 }
 0x177   : > { %v491_v36 = vpop.eup %490 }
 0x178   : > { %v234_v39 = vmul.f32 0.6931472, %v491_v36  ;;  %v265_v41 = vsub.f32 %v264_v37, %v262_v38 }
 0x17a   : > { %v255_v42 = vadd.f32 %v254_v40, %v234_v39  ;;  %v266_v43 = vsub.f32 0.0, %v265_v41 }
 0x17c   : > { %v273_v44 = vsel %vm272_vm1, %v255_v42, 0.0  ;;  %v274_v46 = vsel %vm272_vm1, %v266_v43, 0.0 }
 0x17d   : > { %v276_v45 = vsel %vm275_vm2, %v273_v44, 0.0  ;;  %v286_v47 = vsel %vm275_vm2, %v274_v46, 0.0 }
 0x17e   : > { %277 = vadd.xlane.f32.xlu0 %v276_v45  ;;  %287 = vadd.xlane.f32.xlu1 %v286_v47 }
 0x20b   : > { %v278_v48 = vpop.xlane.xlu0 %277  ;;  %v288_v50 = vpop.xlane.xlu1 %287 }
 0x20c   : > { %v279_v49 = vrot.slane %v278_v48, 4  ;;  %v289_v51 = vrot.slane %v288_v50, 4 }
 0x20e   : > { %v280_v52 = vadd.f32 %v279_v49, %v278_v48  ;;  %v290_v53 = vadd.f32 %v289_v51, %v288_v50 }
 0x210   : > { %v281_v54 = vrot.slane %v280_v52, 2  ;;  %v291_v55 = vrot.slane %v290_v53, 2 }
 0x212   : > { %v282_v56 = vadd.f32 %v281_v54, %v280_v52  ;;  %v292_v57 = vadd.f32 %v291_v55, %v290_v53 }
 0x214   : > { %v283_v58 = vrot.slane %v282_v56, 1  ;;  %v293_v59 = vrot.slane %v292_v57, 1 }
 0x216   : > { %v284_v60 = vadd.f32 %v283_v58, %v282_v56  ;;  %v294_v61 = vadd.f32 %v293_v59, %v292_v57 }
 0x218   : > { %428 = vpush %v284_v60 }
 0x219   : > { %430 = vpush %v294_v61 }
 0x249   : > { %s429_s22 = spop %428 }
 0x24a   : > { %s431_s28 = spop %430  ;;  %v302_v0 = vstv %s429_s22 }
 0x24b   : > { %v300_v63 = vstv %s431_s28 }
 0x24c   : > { %v301_v1 = vsel %vm299_vm3, %v300_v63, 0.0 }
 0x24d   : > { %v303_v2 = vsel %vm298_vm4, %v302_v0, %v301_v1 }
 0x24e   : > { %304 = vst [vmem:[%s211_s26] sm:$0xff] %v303_v2 }
 0x24f   : > { %535 = shalt.err (!%p532_p5)
}
 0x250   : > { %s536_s29 = scalar_lea.hbm %s755_s4, 128  ;;  %s540_s11 = scalar_lea.hbm %s802_s3, 256 }
 0x251   : > { %p537_p8 = scmp.ne.s32.totalorder %s755_s4, %s536_s29  ;;  %p541_p1 = scmp.lt.u32.totalorder %s755_s4, %s802_s3 }
 0x252   : > { %p542_p3 = scmp.lt.u32.totalorder %s540_s11, %s536_s29  ;;  %p544_p6 = scmp.lt.u32.totalorder %s536_s29, %s755_s4 }
 0x253   : > { %p538_p9 = pnand %p537_p8, %p811_p12 }
 0x254   : > { %p543_p11 = por %p542_p3, %p541_p1 }
 0x255   : > { %p539_p0 = pneg %p538_p9 }
 0x256   : > { %p545_p13 = por %p544_p6, %p543_p11 }
 0x258   : > { %p546_p7 = pnand %p545_p13, %p539_p0 }
 0x25a   : > { %549 = shalt.err (!%p546_p7)
}
 0x25b   : > { %434 = dma.vmem_to_hbm [thread:$0]  (%p811_p12), %s757_s27, 128, %s755_s4, %s306_s16  }
 0x25c PF: > { %s331_s20 = sand.u32 1, %s576_s12   ;;  %p812_p10 = scmp.ne.s32.totalorder %s807_s25, 0 }
 0x25d   : > { %p813_p2 = scmp.ge.s32.totalorder %s588_s15, 2  ;;  %s332_s22 = scalar_lea.sflag [#allocation4], %s331_s20 }
 0x25f   : > { %p441_p4 = pnand %p813_p2, %p812_p10 }
 0x261   : > { %571 = dma.done.wait (!%p441_p4), %s332_s22, 128  }
 0x262   : > { %573 = vsyncadd (!%p441_p4), %s332_s22, 4294967168  ;;  %p16_p5 = scmp.ge.s32.totalorder %s637_s18, 4   ;;  %s814_s12 = smov %s580_s13 }
 0x263   : > { %s815_s13 = smov %s584_s14  ;;  %s816_s14 = smov %s649_s21 }
 0x264   : > { %s817_s15 = smov %s637_s18  ;;  %18 = sbr.rel (!%p16_p5) target bundleno = 5 (0x5), region = 83 }
 0x26b   :  { %337 = vsyncpa [#allocation3], 1 }
 0x26c   :  { %339 = vsyncpa [#allocation3 + $0x1], 1 }
 0x26d   :  { %340 = vsyncpa [#allocation4], 1 }
 0x26e   :  { %342 = vsyncpa [#allocation4 + $0x1], 1 }

</bundles_post_ra>
